<compile_context>
chip_gen: v5e
topology: v5e:2x2
jax: 0.10.0
libtpu: 0.0.40
codegen_flags: <defaults>
</compile_context>

<pallas_src>
import functools
import math
import random

import numpy as np

import jax
import jax.numpy as jnp
from jax.experimental import pallas as pl
from jax.experimental.pallas import tpu as pltpu


# ----------------------------------------------------------------------------
# Host-side (cached) selection-matrix / schedule builders
# ----------------------------------------------------------------------------
def _rotation_src_index(h, w, angle_deg):
    """Per-dst flat source index (-1 => zero fill) for rotate(NEAREST, fill=0).

    Inverse mapping dst -> src about center ((w-1)/2, (h-1)/2), nearest via
    round-half-even.
    """
    hw = h * w
    rad = math.radians(angle_deg)
    cos_a, sin_a = math.cos(rad), math.sin(rad)
    o = np.arange(hw, dtype=np.float64)
    oi = np.floor(o / w)                      # output row
    oj = o - oi * w                           # output col
    cx = (w - 1) * 0.5
    cy = (h - 1) * 0.5
    xo = oj - cx
    yo = oi - cy
    sj = np.rint(cos_a * xo - sin_a * yo + cx)
    si = np.rint(sin_a * xo + cos_a * yo + cy)
    inb = (si >= 0) & (si <= h - 1) & (sj >= 0) & (sj <= w - 1)
    src = si.astype(np.int64) * w + sj.astype(np.int64)
    return np.where(inb, src, -1)


def _choose_col_tile(hw):
    """Pick the dst/K column tile and padded hw.

    Tiles are multiples of 128, the bf16 S tile stays <= 2 MiB (safe on
    v5e/v6e/v7x scoped VMEM with double buffering), and we prefer >= 2 dst
    tiles so the "parallel" axis can split across v7x's two TensorCores.
    Never falls back to an (hw, hw) block.
    """
    for t in (1024, 512, 256, 128):
        if hw % t == 0 and (hw // t >= 2 or t == 128):
            return t, hw
    base = 512 if hw >= 4096 else 128
    return base, -(-hw // base) * base


@functools.lru_cache(maxsize=None)
def _rotation_plan(h, w, angle):
    """Cached padded 0/1 selection matrix + band-limited K-tile schedule."""
    hw = h * w
    t, hw_pad = _choose_col_tile(hw)
    nj = hw_pad // t
    src = _rotation_src_index(h, w, angle)            # (hw,) in [-1, hw)

    # Dense 0/1 selection matrix S[src, dst], zero-padded to (hw_pad, hw_pad).
    sel = np.zeros((hw_pad, hw_pad), dtype=np.float32)
    dst = np.arange(hw)
    valid = src >= 0
    sel[src[valid], dst[valid]] = 1.0

    # Band-limit: per dst tile, which K (source) tiles contain any nonzero.
    ktiles = []
    for j in range(nj):
        lo, hi = j * t, min((j + 1) * t, hw)
        if lo < hw:
            s = src[lo:hi]
            s = s[s >= 0]
        else:
            s = np.empty((0,), dtype=np.int64)
        ks = np.unique(s // t).astype(np.int32) if s.size else np.empty((0,), np.int32)
        ktiles.append(ks)
    nk_eff = max(1, max(len(ks) for ks in ktiles))
    ktab = np.zeros((nj, nk_eff), dtype=np.int32)
    kcnt = np.zeros((nj,), dtype=np.int32)
    for j, ks in enumerate(ktiles):
        kcnt[j] = len(ks)
        if len(ks):
            ktab[j, : len(ks)] = ks
            ktab[j, len(ks):] = ks[-1]   # repeat last index -> no extra DMA
    return dict(
        t=t, hw_pad=hw_pad, nj=nj, nk_eff=nk_eff,
        sel=jnp.asarray(sel, dtype=jnp.bfloat16),
        ktab=jnp.asarray(ktab), kcnt=jnp.asarray(kcnt),
    )


@functools.lru_cache(maxsize=None)
def _flip_plan(w):
    """Cached flip matrix; packs rows so stores are lane-dense for small w."""
    g = 128 // math.gcd(w, 128)          # image rows packed per vreg row
    if g * w <= 512:
        pad_w, cw = w, g * w             # block-diagonal packing, no col pad
    else:
        g, pad_w = 1, -(-w // 128) * 128  # pad columns to a multiple of 128
        cw = pad_w
    f = np.zeros((cw, cw), dtype=np.float32)
    idx = np.arange(w)
    for blk in range(g):
        f[blk * pad_w + (w - 1 - idx), blk * pad_w + idx] = 1.0
    return dict(g=g, cw=cw, pad_w=pad_w, fmat=jnp.asarray(f))


# ----------------------------------------------------------------------------
# Pallas kernels
# ----------------------------------------------------------------------------
def select_matmul_kernel(ktab_ref, kcnt_ref, x_ref, s_ref, o_ref):
    """Band-limited accumulating matmul: o[:, jt] += x[:, kt] @ S[kt, jt].

    bf16 x bf16 -> f32 accumulation directly into the resident output block.
    """
    j = pl.program_id(0)
    l = pl.program_id(1)

    @pl.when(l == 0)
    def _():
        o_ref[...] = jnp.zeros_like(o_ref)

    @pl.when(l < kcnt_ref[j])
    def _():
        o_ref[...] += jnp.dot(
            x_ref[...], s_ref[...], preferred_element_type=jnp.float32)


def flip_matmul_kernel(x_ref, f_ref, o_ref):
    """o = x @ F (lane reverse per packed w-chunk via tiny one-hot matmul)."""
    o_ref[...] = jnp.dot(
        x_ref[...], f_ref[...], preferred_element_type=jnp.float32)


# ----------------------------------------------------------------------------
# pallas_call wrappers
# ----------------------------------------------------------------------------
def _rotate_rows(x_bf16, plan):
    """x_bf16: (m_pad, hw_pad) bf16 -> (m_pad, hw_pad) f32 rotated rows."""
    m_pad, hw_pad = x_bf16.shape
    t, nj, nk_eff = plan["t"], plan["nj"], plan["nk_eff"]
    return pl.pallas_call(
        select_matmul_kernel,
        out_shape=jax.ShapeDtypeStruct((m_pad, hw_pad), jnp.float32),
        grid_spec=pltpu.PrefetchScalarGridSpec(
            num_scalar_prefetch=2,                  # ktab, kcnt -> SMEM
            grid=(nj, nk_eff),
            in_specs=[
                # x: only the source-column tiles the band actually needs
                pl.BlockSpec((m_pad, t),
                             lambda j, l, ktab, kcnt: (0, ktab[j, l])),
                # S: (source K tile, dst tile)
                pl.BlockSpec((t, t),
                             lambda j, l, ktab, kcnt: (ktab[j, l], j)),
            ],
            out_specs=pl.BlockSpec((m_pad, t),
                                   lambda j, l, ktab, kcnt: (0, j)),
        ),
        compiler_params=pltpu.CompilerParams(
            dimension_semantics=("parallel", "arbitrary")),
    )(plan["ktab"], plan["kcnt"], x_bf16, plan["sel"])


def _pick_row_tile(rows):
    for t in (512, 256, 128, 64, 32, 16, 8):
        if rows % t == 0:
            return t
    return rows


def _flip_rows(x_all, h, w, plan):
    """x_all: (m_pad, h*w) f32 -> (m_pad, h*w) with each image row reversed."""
    m_pad = x_all.shape[0]
    g, cw, pad_w, fmat = plan["g"], plan["cw"], plan["pad_w"], plan["fmat"]
    rows = m_pad * h
    rows_pad = -(-rows // (8 * g)) * (8 * g)        # packed rows multiple of 8
    x2 = x_all.reshape(rows, w)
    pad_r, pad_c = rows_pad - rows, pad_w - w
    if pad_r or pad_c:
        x2 = jnp.pad(x2, ((0, pad_r), (0, pad_c)))
    xp = x2.reshape(rows_pad // g, cw)              # lane-dense packed rows
    tm = _pick_row_tile(xp.shape[0])
    out = pl.pallas_call(
        flip_matmul_kernel,
        out_shape=jax.ShapeDtypeStruct(xp.shape, jnp.float32),
        grid_spec=pltpu.PrefetchScalarGridSpec(
            num_scalar_prefetch=0,
            grid=(xp.shape[0] // tm,),
            in_specs=[
                pl.BlockSpec((tm, cw), lambda i: (i, 0)),
                pl.BlockSpec((cw, cw), lambda i: (0, 0)),   # F loaded once
            ],
            out_specs=pl.BlockSpec((tm, cw), lambda i: (i, 0)),
        ),
        compiler_params=pltpu.CompilerParams(
            dimension_semantics=("parallel",)),
    )(xp, fmat)
    return out.reshape(rows_pad, pad_w)[:rows, :w].reshape(m_pad, h * w)


# ----------------------------------------------------------------------------
# Module wrapper (forward pass of AugTransform)
# ----------------------------------------------------------------------------
def draw_aug_params(rng=random):
    """Same host-side random policy as the PyTorch module."""
    if rng.random() > 0.5:
        return True, 0.0                                      # hflip branch
    return False, float(rng.choice([-30, -15, 0, 15, 30]))    # rotate branch


def aug_transform(imgs, masks, params=None):
    """
    imgs:  (b, 3, h, w) float32
    masks: (b, h, w)    float32
    returns (cat([imgs, aug(imgs)], 0), cat([masks, aug(masks)], 0))
    """
    if params is None:
        params = draw_aug_params()
    mode_flip, angle = params

    b, c, h, w = imgs.shape
    hw = h * w
    m = b * c + b

    # angle == 0 rotation is the identity: skip the kernel entirely.
    if (not mode_flip) and float(angle) == 0.0:
        return (jnp.concatenate([imgs, imgs], axis=0),
                jnp.concatenate([masks, masks], axis=0))

    # One merged call for imgs + masks (halves launch overhead, fills M).
    x_all = jnp.concatenate(
        [imgs.reshape(b * c, hw), masks.reshape(b, hw)], axis=0)
    m_pad = -(-m // 8) * 8                 # rows up to the f32 sublane tile
    if m_pad != m:
        x_all = jnp.pad(x_all, ((0, m_pad - m), (0, 0)))

    if mode_flip:
        y = _flip_rows(x_all, h, w, _flip_plan(w))
    else:
        plan = _rotation_plan(h, w, float(angle))
        hw_pad = plan["hw_pad"]
        x_bf16 = x_all.astype(jnp.bfloat16)          # native bf16 MXU path
        if hw_pad != hw:
            x_bf16 = jnp.pad(x_bf16, ((0, 0), (0, hw_pad - hw)))
        y = _rotate_rows(x_bf16, plan)[:, :hw]

    img_aug = y[: b * c].reshape(b, c, h, w)
    mask_aug = y[b * c: m].reshape(b, h, w)

    # TODO(synk): avoid these two full-tensor copies via a preallocated
    # (2b, ...) output + input_output_aliases.
    return (jnp.concatenate([imgs, img_aug], axis=0),
            jnp.concatenate([masks, mask_aug], axis=0))


# ----------------------------------------------------------------------------
# Gather reference (uses the same host-side index computation as the kernel)
# ----------------------------------------------------------------------------
def ref_warp_rows(x_flat, h, w, mode_flip, angle):
    hw = h * w
    if mode_flip:
        src = np.arange(hw).reshape(h, w)[:, ::-1].reshape(-1).copy()
        inb = np.ones(hw, dtype=bool)
    else:
        src = _rotation_src_index(h, w, angle)
        inb = src >= 0
        src = np.where(inb, src, 0)
    gathered = x_flat[:, jnp.asarray(src.astype(np.int32))]
    return jnp.where(jnp.asarray(inb)[None, :], gathered, 0.0)


if __name__ == "__main__":
    key = jax.random.PRNGKey(0)
    k1, k2 = jax.random.split(key)

    b, c, h, w = 2, 3, 16, 16
    hw = h * w
    imgs = jax.random.uniform(k1, (b, c, h, w), dtype=jnp.float32)
    masks = jnp.floor(jax.random.uniform(k2, (b, h, w), dtype=jnp.float32) * 5.0)

    configs = [(True, 0.0), (False, 0.0), (False, 15.0), (False, -15.0),
               (False, 30.0), (False, -30.0)]
    for params in configs:
        out_imgs, out_masks = aug_transform(imgs, masks, params)
        jax.block_until_ready((out_imgs, out_masks))
        assert out_imgs.shape == (2 * b, c, h, w)
        assert out_masks.shape == (2 * b, h, w)

        mode_flip, angle = params
        if (not mode_flip) and angle != 0.0:
            # rotate kernel works on bf16-cast values (selection stays exact)
            src_imgs = imgs.astype(jnp.bfloat16).astype(jnp.float32)
            src_masks = masks.astype(jnp.bfloat16).astype(jnp.float32)
        else:
            src_imgs, src_masks = imgs, masks
        ref_img = ref_warp_rows(src_imgs.reshape(b * c, hw), h, w,
                                mode_flip, angle).reshape(b, c, h, w)
        ref_msk = ref_warp_rows(src_masks.reshape(b, hw), h, w,
                                mode_flip, angle).reshape(b, h, w)
        assert jnp.array_equal(out_imgs[:b], imgs)
        assert jnp.array_equal(out_masks[:b], masks)
        assert jnp.allclose(out_imgs[b:], ref_img, atol=1e-6), params
        assert jnp.allclose(out_masks[b:], ref_msk, atol=1e-6), params

    # Second call with the same angle reuses the cached selection plan.
    jax.block_until_ready(aug_transform(imgs, masks, (False, 30.0)))

    # One draw through the host-side random policy (as in the torch module).
    random.seed(0)
    out_imgs, out_masks = aug_transform(imgs, masks)
    jax.block_until_ready((out_imgs, out_masks))

    print("KERNEL_OK")
</pallas_src>

<mosaic_0001>
module attributes {stable_mosaic.version = 11 : i64} {
  func.func @flip_matmul_kernel(%arg0: i32, %arg1: memref<16x128xf32, #tpu.memory_space<vmem>>, %arg2: memref<128x128xf32, #tpu.memory_space<vmem>>, %arg3: memref<16x128xf32, #tpu.memory_space<vmem>>) attributes {dimension_semantics = [#tpu.dimension_semantics<parallel>], iteration_bounds = array<i64: 1>, scalar_prefetch = 0 : i64, scratch_operands = 0 : i64, tpu.core_type = #tpu.core_type<tc>, window_params = [{transform_indices = @transform_0, window_bounds = array<i64: 16, 128>}, {pipeline_mode = #tpu.pipeline_mode<synchronous>, transform_indices = @transform_1, window_bounds = array<i64: 128, 128>}, {transform_indices = @transform_2, window_bounds = array<i64: 16, 128>}]} {
    %c0 = arith.constant 0 : index
    %c0_0 = arith.constant 0 : index
    %0 = vector.load %arg1[%c0, %c0_0] : memref<16x128xf32, #tpu.memory_space<vmem>>, vector<16x128xf32>
    %c0_1 = arith.constant 0 : index
    %c0_2 = arith.constant 0 : index
    %1 = vector.load %arg2[%c0_1, %c0_2] : memref<128x128xf32, #tpu.memory_space<vmem>>, vector<128x128xf32>
    %cst = arith.constant dense<0.000000e+00> : vector<16x128xf32>
    %2 = tpu.matmul %0, %1, %cst {dimension_numbers = #tpu.dot_dimension_numbers<[1], [0], [0], [1], [0, 0, 1, 1], [], []>} : vector<16x128xf32>, vector<128x128xf32>, vector<16x128xf32> -> vector<16x128xf32>
    %c0_3 = arith.constant 0 : index
    %c0_4 = arith.constant 0 : index
    %3 = vector.load %arg3[%c0_3, %c0_4] : memref<16x128xf32, #tpu.memory_space<vmem>>, vector<16x128xf32>
    tpu.vector_store %arg3[%c0_3, %c0_4], %2 {strides = array<i32>} : memref<16x128xf32, #tpu.memory_space<vmem>>, vector<16x128xf32>,
    return
  }
  func.func @transform_0(%arg0: i32) -> (i32, i32) {
    %c0_i32 = arith.constant 0 : i32
    %c0_i32_0 = arith.constant 0 : i32
    return %arg0, %c0_i32 : i32, i32
  }
  func.func @transform_1(%arg0: i32) -> (i32, i32) {
    %c0_i32 = arith.constant 0 : i32
    %c0_i32_0 = arith.constant 0 : i32
    %c0_i32_1 = arith.constant 0 : i32
    return %c0_i32, %c0_i32_0 : i32, i32
  }
  func.func @transform_2(%arg0: i32) -> (i32, i32) {
    %c0_i32 = arith.constant 0 : i32
    %c0_i32_0 = arith.constant 0 : i32
    return %arg0, %c0_i32 : i32, i32
  }
}

</mosaic_0001>

<bundles_post_ra>
// kernel: tpu_custom_call.1
= control target key start
LH: loop header
LB: loop body
LE: loop exit
PB: predicated region body
PF: predicated region fallthrough
CT: control target
= control target key end

     0   :  { %7 = vsyncpa [#allocation3], 0  ;;  %s244_s0 = inlined_call_operand.hbm [shape: f32[16,128], index: 0, kind: input, shape index: {}]   ;;  %s245_s1 = inlined_call_operand.hbm [shape: f32[128,128], index: 1, kind: input, shape index: {}]   ;;  %s246_s2 = inlined_call_operand.hbm [shape: f32[16,128], index: 2, kind: output, shape index: {}]  }
   0x1   :  { %8 = vsyncpa [#allocation6], 0 }
   0x2   :  { %9 = vsyncpa [#allocation4], 0  ;;  %s14_s11 = sshll.u32 %s244_s0, 4  ;;  %s206_s12 = smov [#allocation2]   ;;  %s15_s11 = int_to_ptr.hbm [resolvable:$true] %s14_s11 }
   0x3   :  { %s16_s13 = sshll.u32 %s206_s12, 4  ;;  %s27_s16 = sshll.u32 %s245_s1, 4  ;;  %s17_s13 = int_to_ptr.vmem [resolvable:$true] %s16_s13  ;;  %s28_s16 = int_to_ptr.hbm [resolvable:$true] %s27_s16 }
   0x4   :  { %s207_s17 = smov 128   ;;  %s208_s18 = smov 8  }
   0x5   :  { %22 = dma.hbm_to_vmem [thread:$0]  %s15_s11, 256, %s17_s13, [#allocation3], %s207_s17, %s207_s17, %s208_s18  }
   0x6   :  { %s209_s19 = smov [#allocation5]  }
   0x7   :  { %s29_s20 = sshll.u32 %s209_s19, 4  ;;  %s30_s20 = int_to_ptr.vmem [resolvable:$true] %s29_s20 }
   0x8   :  { %35 = dma.hbm_to_vmem [thread:$0]  %s28_s16, 2048, %s30_s20, [#allocation6], %s207_s17, %s207_s17, %s208_s18  }
   0x9   :  { %200 = dma.done.wait [#allocation3], 256  }
   0xa   :  { %201 = vsyncadd [#allocation3], 4294967040 }
   0xb   :  { %202 = dma.done.wait [#allocation6], 2048  }
   0xc   :  { %203 = vsyncadd [#allocation6], 4294965248  ;;  %v61_v0 = vld [vmem:[#allocation5 + $0x78] sm:$0xff]  ;;  %v60_v1 = vld [vmem:[#allocation5 + $0x70] sm:$0xff]  ;;  %s210_s0 = smov [#allocation7]   ;;  %s93_s23 = sshll.u32 %s246_s2, 4  ;;  %s94_s23 = int_to_ptr.hbm [resolvable:$true] %s93_s23 }
   0xd   :  { %62 = vmatpush.msra.mxu0 %v61_v0  ;;  %107 = vmatpush.msra.mxu1 %v61_v0  ;;  %v59_v2 = vld [vmem:[#allocation5 + $0x68] sm:$0xff]  ;;  %v58_v3 = vld [vmem:[#allocation5 + $0x60] sm:$0xff]  ;;  %v57_v4 = vld [vmem:[#allocation5 + $0x58] sm:$0xff]  ;;  %s91_s1 = sshll.u32 %s210_s0, 4  ;;  %s92_s1 = int_to_ptr.vmem [resolvable:$true] %s91_s1 }
   0xe   :  { %v56_v5 = vld [vmem:[#allocation5 + $0x50] sm:$0xff]  ;;  %v55_v6 = vld [vmem:[#allocation5 + $0x48] sm:$0xff]  ;;  %v54_v7 = vld [vmem:[#allocation5 + $0x40] sm:$0xff] }
   0xf   :  { %63 = vmatpush.msra.mxu0 %v60_v1  ;;  %108 = vmatpush.msra.mxu1 %v60_v1  ;;  %v53_v8 = vld [vmem:[#allocation5 + $0x38] sm:$0xff]  ;;  %v52_v9 = vld [vmem:[#allocation5 + $0x30] sm:$0xff]  ;;  %v51_v10 = vld [vmem:[#allocation5 + $0x28] sm:$0xff] }
  0x10   :  { %v50_v11 = vld [vmem:[#allocation5 + $0x20] sm:$0xff]  ;;  %v49_v12 = vld [vmem:[#allocation5 + $0x18] sm:$0xff]  ;;  %v48_v13 = vld [vmem:[#allocation5 + $0x10] sm:$0xff] }
  0x11   :  { %64 = vmatpush.msra.mxu0 %v59_v2  ;;  %109 = vmatpush.msra.mxu1 %v59_v2  ;;  %v47_v14 = vld [vmem:[#allocation5 + $0x8] sm:$0xff]  ;;  %v46_v15 = vld [vmem:[#allocation5] sm:$0xff]  ;;  %v44_v16 = vld [vmem:[#allocation2] sm:$0xff] }
  0x12   :  { %v45_v17 = vld [vmem:[#allocation2 + $0x8] sm:$0xff] }
  0x13   :  { %65 = vmatpush.msra.mxu0 %v58_v3  ;;  %110 = vmatpush.msra.mxu1 %v58_v3 }
  0x15   :  { %66 = vmatpush.msra.mxu0 %v57_v4  ;;  %111 = vmatpush.msra.mxu1 %v57_v4 }
  0x17   :  { %67 = vmatpush.msra.mxu0 %v56_v5  ;;  %112 = vmatpush.msra.mxu1 %v56_v5 }
  0x19   :  { %68 = vmatpush.msra.mxu0 %v55_v6  ;;  %113 = vmatpush.msra.mxu1 %v55_v6 }
  0x1b   :  { %69 = vmatpush.msra.mxu0 %v54_v7  ;;  %114 = vmatpush.msra.mxu1 %v54_v7 }
  0x1d   :  { %70 = vmatpush.msra.mxu0 %v53_v8  ;;  %115 = vmatpush.msra.mxu1 %v53_v8 }
  0x1f   :  { %71 = vmatpush.msra.mxu0 %v52_v9  ;;  %116 = vmatpush.msra.mxu1 %v52_v9 }
  0x21   :  { %72 = vmatpush.msra.mxu0 %v51_v10  ;;  %117 = vmatpush.msra.mxu1 %v51_v10 }
  0x23   :  { %73 = vmatpush.msra.mxu0 %v50_v11  ;;  %118 = vmatpush.msra.mxu1 %v50_v11 }
  0x25   :  { %74 = vmatpush.msra.mxu0 %v49_v12  ;;  %119 = vmatpush.msra.mxu1 %v49_v12 }
  0x27   :  { %75 = vmatpush.msra.mxu0 %v48_v13  ;;  %120 = vmatpush.msra.mxu1 %v48_v13 }
  0x29   :  { %76 = vmatpush.msra.mxu0 %v47_v14  ;;  %121 = vmatpush.msra.mxu1 %v47_v14 }
  0x2b   :  { %77 = vmatpush.msra.mxu0 %v46_v15  ;;  %122 = vmatpush.msra.mxu1 %v46_v15 }
  0x2c   :  { %78 = vmatmul.f32.vlgmr.msra.gmra.mxu0 %v44_v16  ;;  %81 = vmatmul.f32.vlgmr.msra.gmra.mxu1 %v45_v17 }
  0xa9   :  { %v79_v18 = vpop.f32.mrf.mxu0  ;;  %v82_v19 = vpop.f32.mrf.mxu1 }
  0xaa   :  { %85 = vst [vmem:[#allocation7] sm:$0xff] %v79_v18 }
  0xab   :  { %86 = vst [vmem:[#allocation7 + $0x8] sm:$0xff] %v82_v19 }
  0xac   :  { %99 = dma.vmem_to_hbm [thread:$0]  %s92_s1, 256, %s94_s23, [#allocation4], %s207_s17, %s207_s17, %s208_s18  }
  0xad   :  { %204 = dma.done.wait [#allocation4], 256  }
  0xae   :  { %205 = vsyncadd [#allocation4], 4294967040 }
  0xaf   :  { %104 = vsyncpa [#allocation3], 1 }
  0xb0   :  { %105 = vsyncpa [#allocation6], 1 }
  0xb1   :  { %106 = vsyncpa [#allocation4], 1 }

</bundles_post_ra>
